<compile_context>
chip_gen: v7x
topology: tpu7x:2x2x1
jax: 0.10.0
libtpu: 0.0.40
codegen_flags: <defaults>
</compile_context>

<pallas_src>
import math

import jax
import jax.numpy as jnp
from jax.experimental import pallas as pl
from jax.experimental.pallas import tpu as pltpu


def _round_up(x, m):
    return ((x + m - 1) // m) * m


def critic_kernel(x_ref, wa_ref, ba_ref, wb_ref, bb_ref, wc_ref, bc_ref, q_ref):
    x = x_ref[...]
    # Fused layer 1 (both heads): relu(x @ [W1|W4] + [b1|b4])
    h = jnp.dot(x, wa_ref[...], preferred_element_type=jnp.float32) + ba_ref[...]
    h = jnp.maximum(h, 0.0)
    # Fused layer 2: relu(h @ blockdiag(W2, W5) + [b2|b5])
    h = jnp.dot(h, wb_ref[...], preferred_element_type=jnp.float32) + bb_ref[...]
    h = jnp.maximum(h, 0.0)
    # Fused output layer: h @ blockdiag(W3, W6) + [b3|b6]  ->  (tb, 2) = [q1, q2]
    q = jnp.dot(h, wc_ref[...], preferred_element_type=jnp.float32) + bc_ref[...]
    q_ref[...] = q.astype(q_ref.dtype)


def pack_params(p):
    """Pack twin-head weights into fused operands (done once, outside the kernel)."""
    h1 = p["w1"].shape[1]
    h2 = p["w2"].shape[1]
    f32 = jnp.float32
    wa = jnp.concatenate([p["w1"], p["w4"]], axis=1).astype(f32)          # [in, 2*h1]
    ba = jnp.concatenate([p["b1"], p["b4"]], axis=1).astype(f32)          # [1, 2*h1]
    z12 = jnp.zeros((h1, h2), f32)
    wb = jnp.block([[p["w2"], z12], [z12, p["w5"]]]).astype(f32)          # [2*h1, 2*h2]
    bb = jnp.concatenate([p["b2"], p["b5"]], axis=1).astype(f32)          # [1, 2*h2]
    z3 = jnp.zeros((h2, 1), f32)
    wc = jnp.block([[p["w3"], z3], [z3, p["w6"]]]).astype(f32)            # [2*h2, 2]
    bc = jnp.concatenate([p["b3"], p["b6"]], axis=1).astype(f32)          # [1, 2]
    return {"wa": wa, "ba": ba, "wb": wb, "bb": bb, "wc": wc, "bc": bc}


def critic_forward(s_list, a_list, packed, *, block_b=256):
    """s_list, a_list: lists of [B, d_i] arrays (per-agent obs / actions)."""
    s_a = jnp.concatenate(s_list + a_list, axis=1).astype(jnp.float32)
    B, in_dim = s_a.shape

    wa, ba = packed["wa"], packed["ba"]
    wb, bb = packed["wb"], packed["bb"]
    wc, bc = packed["wc"], packed["bc"]
    two_h1 = wa.shape[1]
    two_h2 = wb.shape[1]

    # Batch tile: multiple of 8 sublanes, capped at block_b; pad batch to fit.
    tb = min(block_b, _round_up(B, 8))
    Bp = _round_up(B, tb)
    if Bp != B:
        s_a = jnp.pad(s_a, ((0, Bp - B), (0, 0)))
    grid = (Bp // tb,)

    q = pl.pallas_call(
        critic_kernel,
        out_shape=jax.ShapeDtypeStruct((Bp, 2), jnp.float32),
        grid=grid,
        in_specs=[
            pl.BlockSpec((tb, in_dim), lambda i: (i, 0)),     # activations: tiled over batch
            pl.BlockSpec((in_dim, two_h1), lambda i: (0, 0)),  # fused weights: resident
            pl.BlockSpec((1, two_h1), lambda i: (0, 0)),
            pl.BlockSpec((two_h1, two_h2), lambda i: (0, 0)),
            pl.BlockSpec((1, two_h2), lambda i: (0, 0)),
            pl.BlockSpec((two_h2, 2), lambda i: (0, 0)),
            pl.BlockSpec((1, 2), lambda i: (0, 0)),
        ],
        out_specs=pl.BlockSpec((tb, 2), lambda i: (i, 0)),
        compiler_params=pltpu.CompilerParams(
            dimension_semantics=("parallel",)),
    )(s_a, wa, ba, wb, bb, wc, bc)

    q = q[:B]
    return q[:, 0:1], q[:, 1:2]


def init_linear(key, fan_in, fan_out):
    """PyTorch nn.Linear default init: U(-1/sqrt(fan_in), 1/sqrt(fan_in)).

    Returns W with shape [in, out] (pre-transposed) and b with shape [1, out].
    """
    kw, kb = jax.random.split(key)
    bound = 1.0 / math.sqrt(fan_in)
    w = jax.random.uniform(kw, (fan_in, fan_out), jnp.float32, -bound, bound)
    b = jax.random.uniform(kb, (1, fan_out), jnp.float32, -bound, bound)
    return w, b


def make_params(key, in_dim, h1, h2):
    keys = jax.random.split(key, 6)
    p = {}
    p["w1"], p["b1"] = init_linear(keys[0], in_dim, h1)
    p["w2"], p["b2"] = init_linear(keys[1], h1, h2)
    p["w3"], p["b3"] = init_linear(keys[2], h2, 1)
    p["w4"], p["b4"] = init_linear(keys[3], in_dim, h1)
    p["w5"], p["b5"] = init_linear(keys[4], h1, h2)
    p["w6"], p["b6"] = init_linear(keys[5], h2, 1)
    return p


def reference_forward(s_list, a_list, p):
    s_a = jnp.concatenate(s_list + a_list, axis=1).astype(jnp.float32)
    h = jnp.maximum(s_a @ p["w1"] + p["b1"], 0.0)
    h = jnp.maximum(h @ p["w2"] + p["b2"], 0.0)
    q1 = h @ p["w3"] + p["b3"]
    g = jnp.maximum(s_a @ p["w4"] + p["b4"], 0.0)
    g = jnp.maximum(g @ p["w5"] + p["b5"], 0.0)
    q2 = g @ p["w6"] + p["b6"]
    return q1, q2


if __name__ == "__main__":
    key = jax.random.PRNGKey(0)

    # Synthetic MASAC config: 2 agents, obs_dim_n = [6, 6], action_dim_n = [2, 2]
    obs_dim_n = [6, 6]
    action_dim_n = [2, 2]
    hidden_dim1 = 32
    hidden_dim2 = 32
    batch = 8

    in_dim = sum(obs_dim_n) + sum(action_dim_n)

    kp, kd = jax.random.split(key)
    params = make_params(kp, in_dim, hidden_dim1, hidden_dim2)
    packed = pack_params(params)

    dkeys = jax.random.split(kd, len(obs_dim_n) + len(action_dim_n))
    s_list = [jax.random.normal(dkeys[i], (batch, d), jnp.float32)
              for i, d in enumerate(obs_dim_n)]
    a_list = [jax.random.normal(dkeys[len(obs_dim_n) + i], (batch, d), jnp.float32)
              for i, d in enumerate(action_dim_n)]

    q1, q2 = critic_forward(s_list, a_list, packed)
    jax.block_until_ready((q1, q2))

    q1_ref, q2_ref = reference_forward(s_list, a_list, params)
    assert q1.shape == (batch, 1) and q2.shape == (batch, 1)
    assert jnp.allclose(q1, q1_ref, atol=1e-5, rtol=1e-5)
    assert jnp.allclose(q2, q2_ref, atol=1e-5, rtol=1e-5)

    # Also check a non-multiple-of-tile batch path (padding branch).
    big_s = [jax.random.normal(dkeys[0], (37, d), jnp.float32) for d in obs_dim_n]
    big_a = [jax.random.normal(dkeys[1], (37, d), jnp.float32) for d in action_dim_n]
    bq1, bq2 = critic_forward(big_s, big_a, packed)
    jax.block_until_ready((bq1, bq2))
    bq1_ref, bq2_ref = reference_forward(big_s, big_a, params)
    assert jnp.allclose(bq1, bq1_ref, atol=1e-5, rtol=1e-5)
    assert jnp.allclose(bq2, bq2_ref, atol=1e-5, rtol=1e-5)

    print("KERNEL_OK")
</pallas_src>

<mosaic_0001>
module attributes {stable_mosaic.version = 11 : i64} {
  func.func @critic_kernel(%arg0: i32, %arg1: memref<8x16xf32, #tpu.memory_space<vmem>>, %arg2: memref<16x64xf32, #tpu.memory_space<vmem>>, %arg3: memref<1x64xf32, #tpu.memory_space<vmem>>, %arg4: memref<64x64xf32, #tpu.memory_space<vmem>>, %arg5: memref<1x64xf32, #tpu.memory_space<vmem>>, %arg6: memref<64x2xf32, #tpu.memory_space<vmem>>, %arg7: memref<1x2xf32, #tpu.memory_space<vmem>>, %arg8: memref<8x2xf32, #tpu.memory_space<vmem>>) attributes {dimension_semantics = [#tpu.dimension_semantics<parallel>], iteration_bounds = array<i64: 1>, scalar_prefetch = 0 : i64, scratch_operands = 0 : i64, tpu.core_type = #tpu.core_type<tc>, window_params = [{transform_indices = @transform_0, window_bounds = array<i64: 8, 16>}, {pipeline_mode = #tpu.pipeline_mode<synchronous>, transform_indices = @transform_1, window_bounds = array<i64: 16, 64>}, {pipeline_mode = #tpu.pipeline_mode<synchronous>, transform_indices = @transform_2, window_bounds = array<i64: 1, 64>}, {pipeline_mode = #tpu.pipeline_mode<synchronous>, transform_indices = @transform_3, window_bounds = array<i64: 64, 64>}, {pipeline_mode = #tpu.pipeline_mode<synchronous>, transform_indices = @transform_4, window_bounds = array<i64: 1, 64>}, {pipeline_mode = #tpu.pipeline_mode<synchronous>, transform_indices = @transform_5, window_bounds = array<i64: 64, 2>}, {pipeline_mode = #tpu.pipeline_mode<synchronous>, transform_indices = @transform_6, window_bounds = array<i64: 1, 2>}, {transform_indices = @transform_7, window_bounds = array<i64: 8, 2>}]} {
    %c0 = arith.constant 0 : index
    %c0_0 = arith.constant 0 : index
    %0 = vector.load %arg1[%c0, %c0_0] : memref<8x16xf32, #tpu.memory_space<vmem>>, vector<8x16xf32>
    %c0_1 = arith.constant 0 : index
    %c0_2 = arith.constant 0 : index
    %1 = vector.load %arg2[%c0_1, %c0_2] : memref<16x64xf32, #tpu.memory_space<vmem>>, vector<16x64xf32>
    %cst = arith.constant dense<0.000000e+00> : vector<8x64xf32>
    %2 = tpu.matmul %0, %1, %cst {dimension_numbers = #tpu.dot_dimension_numbers<[1], [0], [0], [1], [0, 0, 1, 1], [], []>} : vector<8x16xf32>, vector<16x64xf32>, vector<8x64xf32> -> vector<8x64xf32>
    %c0_3 = arith.constant 0 : index
    %c0_4 = arith.constant 0 : index
    %3 = vector.load %arg3[%c0_3, %c0_4] : memref<1x64xf32, #tpu.memory_space<vmem>>, vector<1x64xf32>
    %4 = vector.broadcast %3 : vector<1x64xf32> to vector<8x64xf32>
    %5 = arith.addf %2, %4 : vector<8x64xf32>
    %cst_5 = arith.constant 0.000000e+00 : f32
    %6 = vector.broadcast %cst_5 : f32 to vector<8x64xf32>
    %7 = arith.maximumf %5, %6 : vector<8x64xf32>
    %c0_6 = arith.constant 0 : index
    %c0_7 = arith.constant 0 : index
    %8 = vector.load %arg4[%c0_6, %c0_7] : memref<64x64xf32, #tpu.memory_space<vmem>>, vector<64x64xf32>
    %cst_8 = arith.constant dense<0.000000e+00> : vector<8x64xf32>
    %9 = tpu.matmul %7, %8, %cst_8 {dimension_numbers = #tpu.dot_dimension_numbers<[1], [0], [0], [1], [0, 0, 1, 1], [], []>} : vector<8x64xf32>, vector<64x64xf32>, vector<8x64xf32> -> vector<8x64xf32>
    %c0_9 = arith.constant 0 : index
    %c0_10 = arith.constant 0 : index
    %10 = vector.load %arg5[%c0_9, %c0_10] : memref<1x64xf32, #tpu.memory_space<vmem>>, vector<1x64xf32>
    %11 = vector.broadcast %10 : vector<1x64xf32> to vector<8x64xf32>
    %12 = arith.addf %9, %11 : vector<8x64xf32>
    %cst_11 = arith.constant 0.000000e+00 : f32
    %13 = vector.broadcast %cst_11 : f32 to vector<8x64xf32>
    %14 = arith.maximumf %12, %13 : vector<8x64xf32>
    %c0_12 = arith.constant 0 : index
    %c0_13 = arith.constant 0 : index
    %15 = vector.load %arg6[%c0_12, %c0_13] : memref<64x2xf32, #tpu.memory_space<vmem>>, vector<64x2xf32>
    %cst_14 = arith.constant dense<0.000000e+00> : vector<8x2xf32>
    %16 = tpu.matmul %14, %15, %cst_14 {dimension_numbers = #tpu.dot_dimension_numbers<[1], [0], [0], [1], [0, 0, 1, 1], [], []>} : vector<8x64xf32>, vector<64x2xf32>, vector<8x2xf32> -> vector<8x2xf32>
    %c0_15 = arith.constant 0 : index
    %c0_16 = arith.constant 0 : index
    %17 = vector.load %arg7[%c0_15, %c0_16] : memref<1x2xf32, #tpu.memory_space<vmem>>, vector<1x2xf32>
    %18 = vector.broadcast %17 : vector<1x2xf32> to vector<8x2xf32>
    %19 = arith.addf %16, %18 : vector<8x2xf32>
    %c0_17 = arith.constant 0 : index
    %c0_18 = arith.constant 0 : index
    %20 = vector.load %arg8[%c0_17, %c0_18] : memref<8x2xf32, #tpu.memory_space<vmem>>, vector<8x2xf32>
    tpu.vector_store %arg8[%c0_17, %c0_18], %19 {strides = array<i32>} : memref<8x2xf32, #tpu.memory_space<vmem>>, vector<8x2xf32>,
    return
  }
  func.func @transform_0(%arg0: i32) -> (i32, i32) {
    %c0_i32 = arith.constant 0 : i32
    %c0_i32_0 = arith.constant 0 : i32
    return %arg0, %c0_i32 : i32, i32
  }
  func.func @transform_1(%arg0: i32) -> (i32, i32) {
    %c0_i32 = arith.constant 0 : i32
    %c0_i32_0 = arith.constant 0 : i32
    %c0_i32_1 = arith.constant 0 : i32
    return %c0_i32, %c0_i32_0 : i32, i32
  }
  func.func @transform_2(%arg0: i32) -> (i32, i32) {
    %c0_i32 = arith.constant 0 : i32
    %c0_i32_0 = arith.constant 0 : i32
    %c0_i32_1 = arith.constant 0 : i32
    return %c0_i32, %c0_i32_0 : i32, i32
  }
  func.func @transform_3(%arg0: i32) -> (i32, i32) {
    %c0_i32 = arith.constant 0 : i32
    %c0_i32_0 = arith.constant 0 : i32
    %c0_i32_1 = arith.constant 0 : i32
    return %c0_i32, %c0_i32_0 : i32, i32
  }
  func.func @transform_4(%arg0: i32) -> (i32, i32) {
    %c0_i32 = arith.constant 0 : i32
    %c0_i32_0 = arith.constant 0 : i32
    %c0_i32_1 = arith.constant 0 : i32
    return %c0_i32, %c0_i32_0 : i32, i32
  }
  func.func @transform_5(%arg0: i32) -> (i32, i32) {
    %c0_i32 = arith.constant 0 : i32
    %c0_i32_0 = arith.constant 0 : i32
    %c0_i32_1 = arith.constant 0 : i32
    return %c0_i32, %c0_i32_0 : i32, i32
  }
  func.func @transform_6(%arg0: i32) -> (i32, i32) {
    %c0_i32 = arith.constant 0 : i32
    %c0_i32_0 = arith.constant 0 : i32
    %c0_i32_1 = arith.constant 0 : i32
    return %c0_i32, %c0_i32_0 : i32, i32
  }
  func.func @transform_7(%arg0: i32) -> (i32, i32) {
    %c0_i32 = arith.constant 0 : i32
    %c0_i32_0 = arith.constant 0 : i32
    return %arg0, %c0_i32 : i32, i32
  }
}

</mosaic_0001>

<bundles_post_ra>
// kernel: tpu_custom_call.1
= control target key start
LH: loop header
LB: loop body
LE: loop exit
PB: predicated region body
PF: predicated region fallthrough
CT: control target
= control target key end

     0   :  { %12 = vsyncpa [#allocation3], 0  ;;  %s439_s24 = smov [#allocation2]   ;;  %s563_s0 = inlined_call_operand.vmem [shape: f32[8,16], index: 0, kind: input, shape index: {}]   ;;  %s564_s1 = inlined_call_operand.hbm [shape: f32[16,64], index: 1, kind: input, shape index: {}]   ;;  %s565_s2 = inlined_call_operand.vmem [shape: f32[1,64], index: 2, kind: input, shape index: {}]   ;;  %s566_s3 = inlined_call_operand.vmem [shape: f32[64,64], index: 3, kind: input, shape index: {}]   ;;  %s567_s4 = inlined_call_operand.vmem [shape: f32[1,64], index: 4, kind: input, shape index: {}]   ;;  %s568_s5 = inlined_call_operand.vmem [shape: f32[64,2], index: 5, kind: input, shape index: {}]   ;;  %s569_s6 = inlined_call_operand.vmem [shape: f32[1,2], index: 6, kind: input, shape index: {}]   ;;  %s570_s7 = inlined_call_operand.vmem [shape: f32[8,2], index: 7, kind: output, shape index: {}]  }
   0x1   :  { %s20_s25 = sshll.u32 %s439_s24, 4  ;;  %s415_s28 = scalar_lea.hbm %s564_s1, 256  ;;  %s21_s25 = int_to_ptr.vmem [resolvable:$true] %s20_s25 }
   0x2   :  { %p416_p0 = scmp.ne.s32.totalorder %s564_s1, %s415_s28  ;;  %p419_p1 = scmp.lt.u32.totalorder %s415_s28, %s564_s1 }
   0x4   :  { %p421_p2 = pnand %p419_p1, %p416_p0 }
   0x6   :  { %424 = shalt.err (!%p421_p2)
}
   0x7   :  { %s425_s10 = scalar_lea.vmem %s21_s25, 256  ;;  %p430_p4 = scmp.lt.s32.totalorder %s21_s25, %s21_s25 }
   0x8   :  { %p426_p3 = scmp.ne.s32.totalorder %s21_s25, %s425_s10  ;;  %p431_p5 = scmp.lt.s32.totalorder %s425_s10, %s425_s10 }
   0xa   :  { %p432_p6 = por %p431_p5, %p430_p4 }
   0xc   :  { %p433_p7 = pnand %p432_p6, %p426_p3 }
   0xe   :  { %436 = shalt.err (!%p433_p7)
}
   0xf   :  { %s440_s11 = smov 128   ;;  %s441_s12 = smov 8  }
  0x10   :  { %26 = dma.hbm_to_vmem [thread:$0]  %s564_s1, 256, %s21_s25, [#allocation3], %s440_s11, %s440_s11, %s441_s12  }
  0x11   :  { %437 = dma.done.wait [#allocation3], 256  }
  0x12   :  { %438 = vsyncadd [#allocation3], 4294967040  ;;  %v442_v0 = vmov 0.0|0.0   ;;  %vm443_vm0 = vmmov 0   ;;  %v444_v1 = vmov 0.0   ;;  %v41_v2 = vld [vmem:[#allocation2] sm:$0xff] }
  0x13   :  { %382 = vmatprep.subr.bf16.mxu0 %v442_v0  ;;  %341 = vmatprep.mubr.msk.f32.mxu0 %vm443_vm0, %v444_v1  ;;  %v42_v3 = vld [vmem:[#allocation2 + $0x8] sm:$0xff]  ;;  %v125_v5 = vld [vmem:[%s566_s3] sm:$0xff]  ;;  %v127_v7 = vld [vmem:[%s566_s3 + $0x10] sm:$0xff]  ;;  %vm50_vm1 = vcmask 130048   ;;  %vm140_vm2 = vcmask 523264   ;;  %vm303_vm3 = vcmask 15360  }
  0x14   :  { %385 = vmatprep.subr.bf16.mxu1 %v442_v0  ;;  %360 = vmatprep.mubr.msk.f32.mxu1 %vm443_vm0, %v444_v1  ;;  %v383_v4 = vpack.c.bf16 %v42_v3, %v41_v2  ;;  %v126_v6 = vld [vmem:[%s566_s3 + $0x8] sm:$0xff]  ;;  %v128_v9 = vld [vmem:[%s566_s3 + $0x18] sm:$0xff]  ;;  %v40_v10 = vld [vmem:[%s563_s0] sm:$0xff] }
  0x15   :  { %v386_v8 = vpack.c.bf16 %v126_v6, %v125_v5  ;;  %v389_v11 = vpack.c.bf16 %v128_v9, %v127_v7  ;;  %v129_v12 = vld [vmem:[%s566_s3 + $0x20] sm:$0xff]  ;;  %v130_v13 = vld [vmem:[%s566_s3 + $0x28] sm:$0xff]  ;;  %v131_v15 = vld [vmem:[%s566_s3 + $0x30] sm:$0xff] }
  0x16   :  { %384 = vmatpush3.bf16.msra.mxu0 %v383_v4  ;;  %v392_v14 = vpack.c.bf16 %v130_v13, %v129_v12  ;;  %v132_v16 = vld [vmem:[%s566_s3 + $0x38] sm:$0xff]  ;;  %v215_v18 = vld [vmem:[%s568_s5] sm:$0xff]  ;;  %v216_v19 = vld [vmem:[%s568_s5 + $0x8] sm:$0xff] }
  0x17   :  { %387 = vmatpush3.bf16.msra.mxu1 %v386_v8  ;;  %397 = vmatprep.subr.bf16.mxu0 %v442_v0  ;;  %v395_v17 = vpack.c.bf16 %v132_v16, %v131_v15  ;;  %v217_v20 = vld [vmem:[%s568_s5 + $0x10] sm:$0xff]  ;;  %v398_v21 = vpack.c.bf16 %v216_v19, %v215_v18  ;;  %v218_v22 = vld [vmem:[%s568_s5 + $0x18] sm:$0xff]  ;;  %v219_v24 = vld [vmem:[%s568_s5 + $0x20] sm:$0xff] }
  0x18   :  { %388 = vmatprep.subr.bf16.mxu1 %v442_v0  ;;  %v401_v23 = vpack.c.bf16 %v218_v22, %v217_v20  ;;  %v220_v25 = vld [vmem:[%s568_s5 + $0x28] sm:$0xff]  ;;  %v310_v27 = vld [vmem:[%s565_s2] ss:$0 sm:$0xff]  ;;  %v221_v32 = vld [vmem:[%s568_s5 + $0x30] sm:$0xff] }
  0x19   :  { %342 = vmatmul.mubr.msk.f32.vlgmr.msra.gmra.mrb[0].mxu0 %vm50_vm1, %v40_v10  ;;  %v404_v26 = vpack.c.bf16 %v220_v25, %v219_v24  ;;  %v222_v33 = vld [vmem:[%s568_s5 + $0x38] sm:$0xff]  ;;  %v312_v35 = vld [vmem:[%s567_s4] ss:$0 sm:$0xff] }
  0x1a   :  { %379 = vmatprep.mubr.msk.f32.mxu0 %vm443_vm0, %v444_v1  ;;  %399 = vmatpush3.bf16.msra.mxu0 %v398_v21  ;;  %v407_v34 = vpack.c.bf16 %v222_v33, %v221_v32  ;;  %v314_v40 = vld [vmem:[%s569_s6] ss:$0 sm:$0xff] }
  0x1b   :  { %390 = vmatpush3.bf16.msra.mxu1 %v389_v11  ;;  %400 = vmatprep.subr.bf16.mxu0 %v442_v0 }
  0x1c   :  { %391 = vmatprep.subr.bf16.mxu1 %v442_v0 }
  0x1e   :  { %402 = vmatpush3.bf16.msra.mxu0 %v401_v23 }
  0x1f   :  { %393 = vmatpush3.bf16.msra.mxu1 %v392_v14  ;;  %403 = vmatprep.subr.bf16.mxu0 %v442_v0 }
  0x20   :  { %394 = vmatprep.subr.bf16.mxu1 %v442_v0 }
  0x22   :  { %405 = vmatpush3.bf16.msra.mxu0 %v404_v26 }
  0x23   :  { %396 = vmatpush3.bf16.msra.mxu1 %v395_v17  ;;  %406 = vmatprep.subr.bf16.mxu0 %v442_v0 }
  0x26   :  { %408 = vmatpush3.bf16.msra.mxu0 %v407_v34 }
  0xec   :  { %v120_v28 = vpop.f32.mrb[0].mxu0 }
  0xed   :  { %v121_v29 = vadd.f32 %v310_v27, %v120_v28  ;;  %v343_v30 = vpop.f32.mrb[1].mxu0 }
  0xef   :  { %v124_v31 = vmax.f32 %v121_v29, 0.0 }
  0xf1   :  { %361 = vmatmul.mubr.msk.f32.vlgmr.msra.gmra.mrb[0].mxu1 %vm140_vm2, %v124_v31 }
 0x1c4   :  { %v210_v36 = vpop.f32.mrb[0].mxu1 }
 0x1c5   :  { %v211_v37 = vadd.f32 %v312_v35, %v210_v36  ;;  %v362_v38 = vpop.f32.mrb[1].mxu1 }
 0x1c7   :  { %v214_v39 = vmax.f32 %v211_v37, 0.0 }
 0x1c9   :  { %380 = vmatmul.mubr.msk.f32.vlgmr.msra.gmra.mrb[2].mxu0 %vm140_vm2, %v214_v39 }
 0x29c   :  { %v299_v41 = vpop.f32.mrb[2].mxu0 }
 0x29d   :  { %v300_v42 = vadd.f32 %v314_v40, %v299_v41  ;;  %v381_v43 = vpop.f32.mrb[3].mxu0 }
 0x29f   :  { %304 = vst.msk [vmem:[%s570_s7] sm:$0xff] %vm303_vm3, %v300_v42 }
 0x2a0   :  { %309 = vsyncpa [#allocation3], 1 }

</bundles_post_ra>
